<compile_context>
chip_gen: v5e
topology: v5e:2x2
jax: 0.10.0
libtpu: 0.0.40
codegen_flags: <defaults>
</compile_context>

<pallas_src>
import functools

import numpy as np
import jax
import jax.numpy as jnp
from jax.experimental import pallas as pl
from jax.experimental.pallas import tpu as pltpu

HIDDEN = 20            # hidden_neurons in the PyTorch module
NUM_RES = 3            # num_layers - 1 ResBlocks
OUT_DIM = 5            # SEIRD outputs
PACK = 2               # sublane packing factor: 2*H = 40 rows = 5 full sublane groups
H2 = PACK * HIDDEN     # 40
O2 = PACK * OUT_DIM    # 10

MAX_TILE = 4096        # columns per half-batch tile (=> up to 8192 points / grid step)
MIN_GRID = 4           # keep >=2 blocks per TensorCore on dual-TC chips (v7x)


def _cdiv(a, b):
    return -(-a // b)


def _round_up(x, m):
    return _cdiv(x, m) * m


def _bf16_eup_supported():
    """bf16 EUP/VPU path exists on v6e/v7x; v5e and older get no speedup (only cost)."""
    try:
        kind = jax.devices()[0].device_kind.lower()
    except Exception:
        return False
    return ("v6" in kind) or ("v7" in kind)


def _tanh(z, bf16_tanh):
    if bf16_tanh:
        # ~2x EUP rate on v6e/v7x; casts land on the VPU which has slack here.
        return jnp.tanh(z.astype(jnp.bfloat16)).astype(jnp.float32)
    return jnp.tanh(z)


def statenn_kernel(t_ref, w0_ref, b0_ref, wres_ref, bres_ref, wo_ref, bo_ref, o_ref,
                   *, bf16_tanh):
    # t_ref:    (2, TILE)        two independent half-batch column tiles (lane axis = batch)
    # w0_ref:   (40, 2)          block "diag" of the (H,1) first-layer column
    # b0_ref:   (40, 1)
    # wres_ref: (NUM_RES, 40, 40) block-diagonal ResBlock weights
    # bres_ref: (NUM_RES, 40, 1)
    # wo_ref:   (10, 40)         rows interleaved as 2*o + half
    # bo_ref:   (10, 1)
    # o_ref:    (10, TILE)       lane-dense, unmasked-width store
    t2 = t_ref[...]                                                     # (2, T)

    # First Linear(1,H) for both packed halves: tiny (40,2)@(2,T) MXU matmul.
    z = jnp.dot(w0_ref[...], t2, preferred_element_type=jnp.float32) + b0_ref[...]
    h = _tanh(z, bf16_tanh)                                             # (40, T)

    # ResBlocks: tanh(W_l @ h + b_l) + h  (block-diag weights -> both halves at once)
    for l in range(NUM_RES):
        z = jnp.dot(wres_ref[l], h, preferred_element_type=jnp.float32) + bres_ref[l]
        h = _tanh(z, bf16_tanh) + h                                     # (40, T)

    # Output Linear(H,5) for both halves; row 2*o+half so HBM result reshapes freely.
    o_ref[...] = jnp.dot(wo_ref[...], h, preferred_element_type=jnp.float32) + bo_ref[...]


def pack_params(params):
    """Host-side one-time repacking of PyTorch-layout params into the sublane-packed layout."""
    w0, b0, wres, bres, wo, bo = params
    # First layer: (2H, 2) block structure; half k uses input row k.
    w0p = jnp.zeros((H2, PACK), jnp.float32)
    w0p = w0p.at[:HIDDEN, 0:1].set(w0).at[HIDDEN:, 1:2].set(w0)
    b0p = jnp.tile(b0.reshape(HIDDEN, 1), (PACK, 1))                     # (2H, 1)
    # ResBlocks: block-diagonal (2H, 2H), same weights for both halves.
    zeros_hh = jnp.zeros((NUM_RES, HIDDEN, HIDDEN), jnp.float32)
    top = jnp.concatenate([wres, zeros_hh], axis=2)
    bot = jnp.concatenate([zeros_hh, wres], axis=2)
    wresp = jnp.concatenate([top, bot], axis=1)                          # (R, 2H, 2H)
    bresp = jnp.tile(bres.reshape(NUM_RES, HIDDEN, 1), (1, PACK, 1))     # (R, 2H, 1)
    # Output: row 2*o + half carries output o of half `half` -> free HBM reshape later.
    wop = jnp.zeros((O2, H2), jnp.float32)
    wop = wop.at[0::2, :HIDDEN].set(wo).at[1::2, HIDDEN:].set(wo)        # (10, 40)
    bop = jnp.repeat(bo.reshape(OUT_DIM, 1), PACK, axis=0)               # (10, 1)
    return w0p, b0p, wresp, bresp, wop, bop


def _choose_tile(n_half):
    """Biggest tile that amortizes the ~600-cycle/step overhead while keeping >=MIN_GRID blocks."""
    return min(MAX_TILE, max(128, _round_up(_cdiv(n_half, MIN_GRID), 128)))


def statenn_forward(t, params, *, bf16_tanh=None):
    """StateNN forward.

    t: (N, 1) float32 (PyTorch layout).  params: PyTorch-layout tuple from init_params.
    Returns (OUT_DIM, N) float32, lane-major — the layout the downstream PINN loss
    should consume directly (`.T` recovers the PyTorch (N, OUT_DIM) layout but adds an
    extra HBM transpose pass that costs more than the kernel itself).
    """
    if bf16_tanh is None:
        bf16_tanh = _bf16_eup_supported()

    w0p, b0p, wresp, bresp, wop, bop = pack_params(params)

    n = t.shape[0]
    n_half_raw = _cdiv(n, 2)
    tile = _choose_tile(n_half_raw)
    n_half = _round_up(n_half_raw, tile)
    n_pad = PACK * n_half
    grid = (n_half // tile,)

    # Input plumbing: pad only if needed; both reshapes are contiguous (free).
    t_flat = t.reshape(-1).astype(jnp.float32)
    if n_pad != n:
        t_flat = jnp.pad(t_flat, (0, n_pad - n))
    t2 = t_flat.reshape(PACK, n_half)

    weight_bytes = sum(int(np.prod(a.shape)) * 4
                       for a in (w0p, b0p, wresp, bresp, wop, bop))
    cost = pl.CostEstimate(
        flops=n_pad * (2 * HIDDEN + NUM_RES * 2 * HIDDEN * HIDDEN + 2 * HIDDEN * OUT_DIM),
        transcendentals=n_pad * HIDDEN * (1 + NUM_RES),
        bytes_accessed=n_pad * 4 + OUT_DIM * n_pad * 4 + weight_bytes,
    )

    out_packed = pl.pallas_call(
        functools.partial(statenn_kernel, bf16_tanh=bool(bf16_tanh)),
        out_shape=jax.ShapeDtypeStruct((O2, n_half), jnp.float32),
        grid=grid,
        in_specs=[
            pl.BlockSpec((PACK, tile), lambda i: (0, i)),                # t tile
            pl.BlockSpec((H2, PACK), lambda i: (0, 0)),                  # w0 (resident)
            pl.BlockSpec((H2, 1), lambda i: (0, 0)),                     # b0
            pl.BlockSpec((NUM_RES, H2, H2), lambda i: (0, 0, 0)),        # wres
            pl.BlockSpec((NUM_RES, H2, 1), lambda i: (0, 0, 0)),         # bres
            pl.BlockSpec((O2, H2), lambda i: (0, 0)),                    # wo
            pl.BlockSpec((O2, 1), lambda i: (0, 0)),                     # bo
        ],
        out_specs=pl.BlockSpec((O2, tile), lambda i: (0, i)),
        compiler_params=pltpu.CompilerParams(
            dimension_semantics=("parallel",),
            vmem_limit_bytes=8 * 1024 * 1024,
        ),
        cost_estimate=cost,
    )(t2, w0p, b0p, wresp, bresp, wop, bop)

    # (10, n_half) with rows ordered 2*o+half  ->  (5, n_pad) is a FREE contiguous
    # reshape (columns [0, n_half) = first half of the batch, [n_half, n_pad) = second).
    out = out_packed.reshape(OUT_DIM, n_pad)
    if n_pad != n:
        out = out[:, :n]
    return out                                                           # (OUT_DIM, N)


def xavier_uniform(key, fan_out, fan_in):
    """PyTorch weight layout (out_features, in_features)."""
    bound = float(np.sqrt(6.0 / (fan_in + fan_out)))
    return jax.random.uniform(key, (fan_out, fan_in), jnp.float32, -bound, bound)


def init_params(key):
    """PyTorch-layout parameters (weights xavier-uniform, biases zero, as in the module)."""
    keys = jax.random.split(key, 2 + NUM_RES)
    w0 = xavier_uniform(keys[0], HIDDEN, 1)                              # (H, 1)
    b0 = jnp.zeros((HIDDEN,), jnp.float32)
    wres = jnp.stack([xavier_uniform(keys[1 + i], HIDDEN, HIDDEN)
                      for i in range(NUM_RES)], axis=0)                  # (R, H, H)
    bres = jnp.zeros((NUM_RES, HIDDEN), jnp.float32)
    wo = xavier_uniform(keys[1 + NUM_RES], OUT_DIM, HIDDEN)              # (OUT, H)
    bo = jnp.zeros((OUT_DIM,), jnp.float32)
    return w0, b0, wres, bres, wo, bo


def statenn_reference(t, params):
    """Pure-JAX reference in the standard (N, F) PyTorch layout."""
    w0, b0, wres, bres, wo, bo = params
    h = jnp.tanh(t @ w0.T + b0)
    for l in range(NUM_RES):
        h = jnp.tanh(h @ wres[l].T + bres[l]) + h
    return h @ wo.T + bo


if __name__ == "__main__":
    key = jax.random.PRNGKey(0)
    pkey, bkey, tkey1, tkey2 = jax.random.split(key, 4)
    params = init_params(pkey)

    # Give the biases small non-zero values so the bias/packing path is actually
    # exercised (the PyTorch module initializes them to zero).
    w0, b0, wres, bres, wo, bo = params
    k1, k2, k3 = jax.random.split(bkey, 3)
    b0 = 0.1 * jax.random.normal(k1, b0.shape, jnp.float32)
    bres = 0.1 * jax.random.normal(k2, bres.shape, jnp.float32)
    bo = 0.1 * jax.random.normal(k3, bo.shape, jnp.float32)
    params = (w0, b0, wres, bres, wo, bo)

    # Small single-tile case (exact f32 path).
    batch = 8
    t_small = jax.random.uniform(tkey1, (batch, 1), jnp.float32)
    out_small = jax.block_until_ready(statenn_forward(t_small, params, bf16_tanh=False))
    ref_small = jax.block_until_ready(statenn_reference(t_small, params))
    assert out_small.shape == (OUT_DIM, batch)
    np.testing.assert_allclose(np.asarray(out_small), np.asarray(ref_small).T,
                               rtol=1e-5, atol=1e-5)

    # Larger ragged batch: exercises the multi-tile grid, padding and sublane packing.
    batch2 = 2500
    t_big = jax.random.uniform(tkey2, (batch2, 1), jnp.float32)
    out_big = jax.block_until_ready(statenn_forward(t_big, params, bf16_tanh=False))
    ref_big = jax.block_until_ready(statenn_reference(t_big, params))
    assert out_big.shape == (OUT_DIM, batch2)
    np.testing.assert_allclose(np.asarray(out_big), np.asarray(ref_big).T,
                               rtol=1e-5, atol=1e-5)

    # bf16-tanh fast path (only where the EUP has a bf16 mode, i.e. v6e/v7x).
    # TODO(synk): validate the ~2-3 decimal-digit tanh precision loss against PINN
    # training loss before enabling it in training; here we only sanity-check it.
    if _bf16_eup_supported():
        out_fast = jax.block_until_ready(statenn_forward(t_big, params, bf16_tanh=True))
        diff = float(np.max(np.abs(np.asarray(out_fast) - np.asarray(ref_big).T)))
        assert np.isfinite(diff) and diff < 0.5, f"bf16-tanh path diverged: {diff}"

    print("KERNEL_OK")
</pallas_src>

<mosaic_0001>
module attributes {stable_mosaic.version = 11 : i64} {
  func.func @statenn_kernel(%arg0: i32, %arg1: memref<2x128xf32, #tpu.memory_space<vmem>>, %arg2: memref<40x2xf32, #tpu.memory_space<vmem>>, %arg3: memref<40x1xf32, #tpu.memory_space<vmem>>, %arg4: memref<3x40x40xf32, #tpu.memory_space<vmem>>, %arg5: memref<3x40x1xf32, #tpu.memory_space<vmem>>, %arg6: memref<10x40xf32, #tpu.memory_space<vmem>>, %arg7: memref<10x1xf32, #tpu.memory_space<vmem>>, %arg8: memref<10x128xf32, #tpu.memory_space<vmem>>) attributes {dimension_semantics = [#tpu.dimension_semantics<parallel>], iteration_bounds = array<i64: 1>, scalar_prefetch = 0 : i64, scratch_operands = 0 : i64, tpu.core_type = #tpu.core_type<tc>, window_params = [{transform_indices = @transform_0, window_bounds = array<i64: 2, 128>}, {pipeline_mode = #tpu.pipeline_mode<synchronous>, transform_indices = @transform_1, window_bounds = array<i64: 40, 2>}, {pipeline_mode = #tpu.pipeline_mode<synchronous>, transform_indices = @transform_2, window_bounds = array<i64: 40, 1>}, {pipeline_mode = #tpu.pipeline_mode<synchronous>, transform_indices = @transform_3, window_bounds = array<i64: 3, 40, 40>}, {pipeline_mode = #tpu.pipeline_mode<synchronous>, transform_indices = @transform_4, window_bounds = array<i64: 3, 40, 1>}, {pipeline_mode = #tpu.pipeline_mode<synchronous>, transform_indices = @transform_5, window_bounds = array<i64: 10, 40>}, {pipeline_mode = #tpu.pipeline_mode<synchronous>, transform_indices = @transform_6, window_bounds = array<i64: 10, 1>}, {transform_indices = @transform_7, window_bounds = array<i64: 10, 128>}]} {
    %c0 = arith.constant 0 : index
    %c0_0 = arith.constant 0 : index
    %0 = vector.load %arg1[%c0, %c0_0] : memref<2x128xf32, #tpu.memory_space<vmem>>, vector<2x128xf32>
    %c0_1 = arith.constant 0 : index
    %c0_2 = arith.constant 0 : index
    %1 = vector.load %arg2[%c0_1, %c0_2] : memref<40x2xf32, #tpu.memory_space<vmem>>, vector<40x2xf32>
    %cst = arith.constant dense<0.000000e+00> : vector<40x128xf32>
    %2 = tpu.matmul %1, %0, %cst {dimension_numbers = #tpu.dot_dimension_numbers<[1], [0], [0], [1], [0, 0, 1, 1], [], []>} : vector<40x2xf32>, vector<2x128xf32>, vector<40x128xf32> -> vector<40x128xf32>
    %c0_3 = arith.constant 0 : index
    %c0_4 = arith.constant 0 : index
    %3 = vector.load %arg3[%c0_3, %c0_4] : memref<40x1xf32, #tpu.memory_space<vmem>>, vector<40x1xf32>
    %4 = vector.broadcast %3 : vector<40x1xf32> to vector<40x128xf32>
    %5 = arith.addf %2, %4 : vector<40x128xf32>
    %6 = math.tanh %5 : vector<40x128xf32>
    %c0_5 = arith.constant 0 : index
    %c0_6 = arith.constant 0 : index
    %c0_7 = arith.constant 0 : index
    %7 = vector.load %arg4[%c0_5, %c0_6, %c0_7] : memref<3x40x40xf32, #tpu.memory_space<vmem>>, vector<1x40x40xf32>
    %8 = vector.shape_cast %7 : vector<1x40x40xf32> to vector<40x40xf32>
    %cst_8 = arith.constant dense<0.000000e+00> : vector<40x128xf32>
    %9 = tpu.matmul %8, %6, %cst_8 {dimension_numbers = #tpu.dot_dimension_numbers<[1], [0], [0], [1], [0, 0, 1, 1], [], []>} : vector<40x40xf32>, vector<40x128xf32>, vector<40x128xf32> -> vector<40x128xf32>
    %c0_9 = arith.constant 0 : index
    %c0_10 = arith.constant 0 : index
    %c0_11 = arith.constant 0 : index
    %10 = vector.load %arg5[%c0_9, %c0_10, %c0_11] : memref<3x40x1xf32, #tpu.memory_space<vmem>>, vector<1x40x1xf32>
    %11 = vector.shape_cast %10 : vector<1x40x1xf32> to vector<40x1xf32>
    %12 = vector.broadcast %11 : vector<40x1xf32> to vector<40x128xf32>
    %13 = arith.addf %9, %12 : vector<40x128xf32>
    %14 = math.tanh %13 : vector<40x128xf32>
    %15 = arith.addf %14, %6 : vector<40x128xf32>
    %c1 = arith.constant 1 : index
    %c0_12 = arith.constant 0 : index
    %c0_13 = arith.constant 0 : index
    %16 = vector.load %arg4[%c1, %c0_12, %c0_13] : memref<3x40x40xf32, #tpu.memory_space<vmem>>, vector<1x40x40xf32>
    %17 = vector.shape_cast %16 : vector<1x40x40xf32> to vector<40x40xf32>
    %cst_14 = arith.constant dense<0.000000e+00> : vector<40x128xf32>
    %18 = tpu.matmul %17, %15, %cst_14 {dimension_numbers = #tpu.dot_dimension_numbers<[1], [0], [0], [1], [0, 0, 1, 1], [], []>} : vector<40x40xf32>, vector<40x128xf32>, vector<40x128xf32> -> vector<40x128xf32>
    %c1_15 = arith.constant 1 : index
    %c0_16 = arith.constant 0 : index
    %c0_17 = arith.constant 0 : index
    %19 = vector.load %arg5[%c1_15, %c0_16, %c0_17] : memref<3x40x1xf32, #tpu.memory_space<vmem>>, vector<1x40x1xf32>
    %20 = vector.shape_cast %19 : vector<1x40x1xf32> to vector<40x1xf32>
    %21 = vector.broadcast %20 : vector<40x1xf32> to vector<40x128xf32>
    %22 = arith.addf %18, %21 : vector<40x128xf32>
    %23 = math.tanh %22 : vector<40x128xf32>
    %24 = arith.addf %23, %15 : vector<40x128xf32>
    %c2 = arith.constant 2 : index
    %c0_18 = arith.constant 0 : index
    %c0_19 = arith.constant 0 : index
    %25 = vector.load %arg4[%c2, %c0_18, %c0_19] : memref<3x40x40xf32, #tpu.memory_space<vmem>>, vector<1x40x40xf32>
    %26 = vector.shape_cast %25 : vector<1x40x40xf32> to vector<40x40xf32>
    %cst_20 = arith.constant dense<0.000000e+00> : vector<40x128xf32>
    %27 = tpu.matmul %26, %24, %cst_20 {dimension_numbers = #tpu.dot_dimension_numbers<[1], [0], [0], [1], [0, 0, 1, 1], [], []>} : vector<40x40xf32>, vector<40x128xf32>, vector<40x128xf32> -> vector<40x128xf32>
    %c2_21 = arith.constant 2 : index
    %c0_22 = arith.constant 0 : index
    %c0_23 = arith.constant 0 : index
    %28 = vector.load %arg5[%c2_21, %c0_22, %c0_23] : memref<3x40x1xf32, #tpu.memory_space<vmem>>, vector<1x40x1xf32>
    %29 = vector.shape_cast %28 : vector<1x40x1xf32> to vector<40x1xf32>
    %30 = vector.broadcast %29 : vector<40x1xf32> to vector<40x128xf32>
    %31 = arith.addf %27, %30 : vector<40x128xf32>
    %32 = math.tanh %31 : vector<40x128xf32>
    %33 = arith.addf %32, %24 : vector<40x128xf32>
    %c0_24 = arith.constant 0 : index
    %c0_25 = arith.constant 0 : index
    %34 = vector.load %arg6[%c0_24, %c0_25] : memref<10x40xf32, #tpu.memory_space<vmem>>, vector<10x40xf32>
    %cst_26 = arith.constant dense<0.000000e+00> : vector<10x128xf32>
    %35 = tpu.matmul %34, %33, %cst_26 {dimension_numbers = #tpu.dot_dimension_numbers<[1], [0], [0], [1], [0, 0, 1, 1], [], []>} : vector<10x40xf32>, vector<40x128xf32>, vector<10x128xf32> -> vector<10x128xf32>
    %c0_27 = arith.constant 0 : index
    %c0_28 = arith.constant 0 : index
    %36 = vector.load %arg7[%c0_27, %c0_28] : memref<10x1xf32, #tpu.memory_space<vmem>>, vector<10x1xf32>
    %37 = vector.broadcast %36 : vector<10x1xf32> to vector<10x128xf32>
    %38 = arith.addf %35, %37 : vector<10x128xf32>
    %c0_29 = arith.constant 0 : index
    %c0_30 = arith.constant 0 : index
    %39 = vector.load %arg8[%c0_29, %c0_30] : memref<10x128xf32, #tpu.memory_space<vmem>>, vector<10x128xf32>
    tpu.vector_store %arg8[%c0_29, %c0_30], %38 {strides = array<i32>} : memref<10x128xf32, #tpu.memory_space<vmem>>, vector<10x128xf32>,
    return
  }
  func.func @transform_0(%arg0: i32) -> (i32, i32) {
    %c0_i32 = arith.constant 0 : i32
    %c0_i32_0 = arith.constant 0 : i32
    return %c0_i32, %arg0 : i32, i32
  }
  func.func @transform_1(%arg0: i32) -> (i32, i32) {
    %c0_i32 = arith.constant 0 : i32
    %c0_i32_0 = arith.constant 0 : i32
    %c0_i32_1 = arith.constant 0 : i32
    return %c0_i32, %c0_i32_0 : i32, i32
  }
  func.func @transform_2(%arg0: i32) -> (i32, i32) {
    %c0_i32 = arith.constant 0 : i32
    %c0_i32_0 = arith.constant 0 : i32
    %c0_i32_1 = arith.constant 0 : i32
    return %c0_i32, %c0_i32_0 : i32, i32
  }
  func.func @transform_3(%arg0: i32) -> (i32, i32, i32) {
    %c0_i32 = arith.constant 0 : i32
    %c0_i32_0 = arith.constant 0 : i32
    %c0_i32_1 = arith.constant 0 : i32
    %c0_i32_2 = arith.constant 0 : i32
    return %c0_i32, %c0_i32_0, %c0_i32_1 : i32, i32, i32
  }
  func.func @transform_4(%arg0: i32) -> (i32, i32, i32) {
    %c0_i32 = arith.constant 0 : i32
    %c0_i32_0 = arith.constant 0 : i32
    %c0_i32_1 = arith.constant 0 : i32
    %c0_i32_2 = arith.constant 0 : i32
    return %c0_i32, %c0_i32_0, %c0_i32_1 : i32, i32, i32
  }
  func.func @transform_5(%arg0: i32) -> (i32, i32) {
    %c0_i32 = arith.constant 0 : i32
    %c0_i32_0 = arith.constant 0 : i32
    %c0_i32_1 = arith.constant 0 : i32
    return %c0_i32, %c0_i32_0 : i32, i32
  }
  func.func @transform_6(%arg0: i32) -> (i32, i32) {
    %c0_i32 = arith.constant 0 : i32
    %c0_i32_0 = arith.constant 0 : i32
    %c0_i32_1 = arith.constant 0 : i32
    return %c0_i32, %c0_i32_0 : i32, i32
  }
  func.func @transform_7(%arg0: i32) -> (i32, i32) {
    %c0_i32 = arith.constant 0 : i32
    %c0_i32_0 = arith.constant 0 : i32
    return %c0_i32, %arg0 : i32, i32
  }
}

</mosaic_0001>

<bundles_post_ra>
// kernel: tpu_custom_call.1
= control target key start
LH: loop header
LB: loop body
LE: loop exit
PB: predicated region body
PF: predicated region fallthrough
CT: control target
= control target key end

     0   :  { %vm79_vm0 = vcmask 1041408   ;;  %v580_v3 = vmov 0   ;;  %vm63_vm1 = vcmask 15360   ;;  %s784_s0 = inlined_call_operand.vmem [shape: f32[2,128], index: 0, kind: input, shape index: {}]   ;;  %s785_s1 = inlined_call_operand.vmem [shape: f32[40,2], index: 1, kind: input, shape index: {}]   ;;  %s786_s2 = inlined_call_operand.vmem [shape: f32[40,1], index: 2, kind: input, shape index: {}]   ;;  %s787_s3 = inlined_call_operand.vmem [shape: f32[3,40,40], index: 3, kind: input, shape index: {}]   ;;  %s788_s4 = inlined_call_operand.vmem [shape: f32[3,40,1], index: 4, kind: input, shape index: {}]   ;;  %s789_s5 = inlined_call_operand.vmem [shape: f32[10,40], index: 5, kind: input, shape index: {}]   ;;  %s790_s6 = inlined_call_operand.vmem [shape: f32[10,1], index: 6, kind: input, shape index: {}]   ;;  %s791_s7 = inlined_call_operand.hbm [shape: f32[10,128], index: 7, kind: output, shape index: {}]  }
   0x1   :  { %v27_v0 = vld [vmem:[%s784_s0] sm:$0x3]  ;;  %v35_v2 = vld [vmem:[%s786_s2 + $0x10] sm:$0xff]  ;;  %512 = vset.pattern.permute.xlu1 %v580_v3  ;;  %511 = vset.pattern.permute.xlu0 %v580_v3 }
   0x2   :  { %v37_v1 = vld [vmem:[%s786_s2 + $0x20] sm:$0xff]  ;;  %464 = vmatpush.msk.msra.mxu0 %vm79_vm0, %v27_v0  ;;  %50 = vperm.xlu1 %512, %v35_v2  }
   0x3   :  { %v28_v4 = vld [vmem:[%s785_s1] sm:$0xff]  ;;  %60 = vperm.xlu0 %511, %v37_v1   ;;  %513 = vset.pattern.permute.xlu2 %v580_v3 }
   0x4   :  { %465 = vmatmul.msk.f32.vlgmr.msra.gmra.mxu0 %vm63_vm1, %v28_v4  ;;  %v33_v5 = vld [vmem:[%s786_s2] sm:$0xff] }
   0x5   :  { %40 = vperm.xlu2 %513, %v33_v5  }
   0x6   :  { %12 = vsyncpa [#allocation3], 0  ;;  %v36_v6 = vld [vmem:[%s786_s2 + $0x18] sm:$0xff]  ;;  %v34_v7 = vld [vmem:[%s786_s2 + $0x8] sm:$0xff]  ;;  %vm155_vm2 = vcmask 326656   ;;  %s581_s0 = smov [#allocation2]  }
   0x7   :  { %v29_v8 = vld [vmem:[%s785_s1 + $0x8] sm:$0xff]  ;;  %v129_v9 = vld [vmem:[%s788_s4 + $0x20] sm:$0xff]  ;;  %v128_v10 = vld [vmem:[%s788_s4 + $0x18] sm:$0xff]  ;;  %s450_s9 = sshll.u32 %s581_s0, 4  ;;  %s452_s12 = sshll.u32 %s791_s7, 4  ;;  %s451_s9 = int_to_ptr.vmem [resolvable:$true] %s450_s9  ;;  %s453_s12 = int_to_ptr.hbm [resolvable:$true] %s452_s12 }
   0x8   :  { %v127_v11 = vld [vmem:[%s788_s4 + $0x10] sm:$0xff]  ;;  %v126_v13 = vld [vmem:[%s788_s4 + $0x8] sm:$0xff]  ;;  %v125_v14 = vld [vmem:[%s788_s4] sm:$0xff]  ;;  %s582_s13 = smov 128  }
   0x9   :  { %v30_v12 = vld [vmem:[%s785_s1 + $0x10] sm:$0xff]  ;;  %v484_v15 = vld [vmem:[%s788_s4 + $0x48] sm:$0xff]  ;;  %v31_v16 = vld [vmem:[%s785_s1 + $0x18] sm:$0xff] }
   0xa   :  { %45 = vperm.xlu1 %512, %v34_v7   ;;  %v483_v17 = vld [vmem:[%s788_s4 + $0x40] sm:$0xff]  ;;  %v482_v18 = vld [vmem:[%s788_s4 + $0x38] sm:$0xff]  ;;  %v481_v19 = vld [vmem:[%s788_s4 + $0x30] sm:$0xff] }
   0xb   :  { %55 = vperm.xlu0 %511, %v36_v6   ;;  %v32_v20 = vld [vmem:[%s785_s1 + $0x20] sm:$0xff]  ;;  %v480_v21 = vld [vmem:[%s788_s4 + $0x28] sm:$0xff]  ;;  %v499_v22 = vld [vmem:[%s788_s4 + $0x70] sm:$0xff] }
   0xc   :  { %466 = vmatmul.msk.f32.gmra.mxu0 %vm63_vm1, %v29_v8  ;;  %v498_v23 = vld [vmem:[%s788_s4 + $0x68] sm:$0xff]  ;;  %v497_v24 = vld [vmem:[%s788_s4 + $0x60] sm:$0xff]  ;;  %v496_v25 = vld [vmem:[%s788_s4 + $0x58] sm:$0xff] }
   0xd   :  { %152 = vperm.xlu2 %513, %v129_v9   ;;  %v495_v26 = vld [vmem:[%s788_s4 + $0x50] sm:$0xff]  ;;  %v403_v27 = vld [vmem:[%s790_s6] sm:$0xff]  ;;  %v404_v28 = vld [vmem:[%s790_s6 + $0x8] sm:$0x3] }
   0xe   :  { %v120_v48 = vld [vmem:[%s787_s3] sm:$0xff]  ;;  %v121_v50 = vld [vmem:[%s787_s3 + $0x8] sm:$0xff]  ;;  %v122_v51 = vld [vmem:[%s787_s3 + $0x10] sm:$0xff] }
   0xf   :  { %v123_v52 = vld [vmem:[%s787_s3 + $0x18] sm:$0xff]  ;;  %v124_v53 = vld [vmem:[%s787_s3 + $0x20] sm:$0xff] }
  0x12   :  { %142 = vperm.xlu1 %512, %v127_v11  }
  0x13   :  { %147 = vperm.xlu0 %511, %v128_v10  }
  0x14   :  { %467 = vmatmul.msk.f32.gmra.mxu0 %vm63_vm1, %v30_v12 }
  0x15   :  { %137 = vperm.xlu2 %513, %v126_v13  }
  0x1a   :  { %247 = vperm.xlu1 %512, %v484_v15   ;;  %v475_v15 = vld [vmem:[%s787_s3 + $0x28] sm:$0xff] }
  0x1b   :  { %132 = vperm.xlu0 %511, %v125_v14  }
  0x1c   :  { %468 = vmatmul.msk.f32.gmra.mxu0 %vm63_vm1, %v31_v16  ;;  %v476_v16 = vld [vmem:[%s787_s3 + $0x30] sm:$0xff] }
  0x1d   :  { %242 = vperm.xlu2 %513, %v483_v17   ;;  %v477_v17 = vld [vmem:[%s787_s3 + $0x38] sm:$0xff] }
  0x22   :  { %232 = vperm.xlu1 %512, %v481_v19   ;;  %v479_v19 = vld [vmem:[%s787_s3 + $0x48] sm:$0xff] }
  0x23   :  { %237 = vperm.xlu0 %511, %v482_v18   ;;  %v478_v18 = vld [vmem:[%s787_s3 + $0x40] sm:$0xff] }
  0x24   :  { %469 = vmatmul.msk.f32.gmra.mxu0 %vm63_vm1, %v32_v20 }
  0x25   :  { %227 = vperm.xlu2 %513, %v480_v21  }
  0x2a   :  { %336 = vperm.xlu1 %512, %v498_v23  }
  0x2b   :  { %341 = vperm.xlu0 %511, %v499_v22  }
  0x2d   :  { %331 = vperm.xlu2 %513, %v497_v24  }
  0x32   :  { %321 = vperm.xlu1 %512, %v495_v26  }
  0x33   :  { %326 = vperm.xlu0 %511, %v496_v25  }
  0x35   :  { %407 = vperm.xlu2 %513, %v403_v27  }
  0x3b   :  { %412 = vperm.xlu0 %511, %v404_v28  }
  0x5f   :  { %v41_v42 = vpop.permute.xlu2 %40 }
  0x67   :  { %v153_v57 = vpop.permute.xlu2 %152 }
  0x6f   :  { %v138_v1 = vpop.permute.xlu2 %137 }
  0x74   :  { %v51_v34 = vpop.permute.xlu1 %50 }
  0x75   :  { %v61_v32 = vpop.permute.xlu0 %60 }
  0x77   :  { %v243_v25 = vpop.permute.xlu2 %242 }
  0x7c   :  { %v46_v40 = vpop.permute.xlu1 %45 }
  0x7d   :  { %v56_v35 = vpop.permute.xlu0 %55 }
  0x81   :  { %v100_v29 = vpop.f32.mrf.mxu0 }
  0x82   :  { %v101_v43 = vadd.f32 %v100_v29, %v41_v42 }
  0x84   :  { %v143_v61 = vpop.permute.xlu1 %142 }
  0x85   :  { %v148_v59 = vpop.permute.xlu0 %147 }
  0x89   :  { %v103_v30 = vpop.f32.mrf.mxu0 }
  0x8a   :  { %v104_v41 = vadd.f32 %v103_v30, %v46_v40 }
  0x8c   :  { %v248_v23 = vpop.permute.xlu1 %247 }
  0x8d   :  { %v133_v3 = vpop.permute.xlu0 %132 }
  0x91   :  { %v106_v31 = vpop.f32.mrf.mxu0 }
  0x92   :  { %v107_v39 = vadd.f32 %v106_v31, %v51_v34 }
  0x94   :  { %v233_v31 = vpop.permute.xlu1 %232 }
  0x95   :  { %v238_v27 = vpop.permute.xlu0 %237 }
  0x99   :  { %v109_v33 = vpop.f32.mrf.mxu0 }
  0x9a   :  { %v110_v37 = vadd.f32 %v109_v33, %v56_v35  ;;  %v228_v33 = vpop.permute.xlu2 %227 }
  0xa1   :  { %v112_v36 = vpop.f32.mrf.mxu0 }
  0xa2   :  { %v113_v38 = vadd.f32 %v112_v36, %v61_v32 }
  0xa4   :  { %514 = vtanh.f32 %v113_v38 }
  0xa5   :  { %516 = vtanh.f32 %v110_v37 }
  0xa6   :  { %518 = vtanh.f32 %v107_v39 }
  0xa7   :  { %520 = vtanh.f32 %v104_v41 }
  0xa8   :  { %522 = vtanh.f32 %v101_v43 }
  0xaa   :  { %v515_v44 = vpop.eup %514 }
  0xab   :  { %182 = vmatpush.msra.mxu1 %v515_v44  ;;  %v517_v45 = vpop.eup %516 }
  0xac   :  { %v519_v46 = vpop.eup %518 }
  0xad   :  { %183 = vmatpush.msra.mxu1 %v517_v45  ;;  %v521_v47 = vpop.eup %520 }
  0xae   :  { %v523_v49 = vpop.eup %522 }
  0xaf   :  { %184 = vmatpush.msra.mxu1 %v519_v46 }
  0xb1   :  { %185 = vmatpush.msra.mxu1 %v521_v47 }
  0xb3   :  { %186 = vmatpush.msra.mxu1 %v523_v49 }
  0xb4   :  { %470 = vmatmul.msk.f32.vlgmr.msra.gmra.mxu1 %vm155_vm2, %v120_v48  ;;  %v493_v48 = vld [vmem:[%s787_s3 + $0x68] sm:$0xff] }
  0xbc   :  { %471 = vmatmul.msk.f32.gmra.mxu1 %vm155_vm2, %v121_v50 }
  0xc4   :  { %472 = vmatmul.msk.f32.gmra.mxu1 %vm155_vm2, %v122_v51 }
  0xcc   :  { %473 = vmatmul.msk.f32.gmra.mxu1 %vm155_vm2, %v123_v52 }
  0xd4   :  { %474 = vmatmul.msk.f32.gmra.mxu1 %vm155_vm2, %v124_v53  ;;  %v342_v53 = vpop.permute.xlu0 %341 }
 0x131   :  { %v188_v54 = vpop.f32.mrf.mxu1 }
 0x132   :  { %v189_v4 = vadd.f32 %v188_v54, %v133_v3 }
 0x139   :  { %v191_v55 = vpop.f32.mrf.mxu1 }
 0x13a   :  { %v192_v2 = vadd.f32 %v191_v55, %v138_v1  ;;  %v337_v55 = vpop.permute.xlu1 %336 }
 0x141   :  { %v194_v56 = vpop.f32.mrf.mxu1 }
 0x142   :  { %v195_v63 = vadd.f32 %v194_v56, %v143_v61  ;;  %v327_v61 = vpop.permute.xlu0 %326 }
 0x149   :  { %v197_v58 = vpop.f32.mrf.mxu1 }
 0x14a   :  { %v198_v60 = vadd.f32 %v197_v58, %v148_v59 }
 0x14c   :  { %524 = vtanh.f32 %v198_v60 }
 0x151   :  { %v200_v62 = vpop.f32.mrf.mxu1 }
 0x152   :  { %v201_v0 = vadd.f32 %v200_v62, %v153_v57  ;;  %v525_v5 = vpop.eup %524  ;;  %v332_v57 = vpop.permute.xlu2 %331 }
 0x153   :  { %v211_v9 = vadd.f32 %v525_v5, %v517_v45  ;;  %v490_v45 = vld [vmem:[%s787_s3 + $0x50] sm:$0xff] }
 0x154   :  { %526 = vtanh.f32 %v201_v0 }
 0x155   :  { %528 = vtanh.f32 %v195_v63  ;;  %v322_v63 = vpop.permute.xlu1 %321 }
 0x156   :  { %530 = vtanh.f32 %v192_v2 }
 0x157   :  { %532 = vtanh.f32 %v189_v4 }
 0x15a   :  { %v527_v6 = vpop.eup %526 }
 0x15b   :  { %v212_v7 = vadd.f32 %v527_v6, %v515_v44  ;;  %v529_v8 = vpop.eup %528 }
 0x15c   :  { %v531_v10 = vpop.eup %530  ;;  %v210_v11 = vadd.f32 %v529_v8, %v519_v46  ;;  %v491_v46 = vld [vmem:[%s787_s3 + $0x58] sm:$0xff] }
 0x15d   :  { %276 = vmatpush.msra.mxu2 %v212_v7  ;;  %v533_v12 = vpop.eup %532  ;;  %v209_v13 = vadd.f32 %v531_v10, %v521_v47  ;;  %v492_v47 = vld [vmem:[%s787_s3 + $0x60] sm:$0xff] }
 0x15e   :  { %v208_v14 = vadd.f32 %v533_v12, %v523_v49  ;;  %v494_v49 = vld [vmem:[%s787_s3 + $0x70] sm:$0xff]  ;;  %v402_v12 = vld [vmem:[%s789_s5 + $0x8] sm:$0x3] }
 0x15f   :  { %277 = vmatpush.msra.mxu2 %v211_v9 }
 0x161   :  { %278 = vmatpush.msra.mxu2 %v210_v11 }
 0x163   :  { %279 = vmatpush.msra.mxu2 %v209_v13 }
 0x165   :  { %280 = vmatpush.msra.mxu2 %v208_v14 }
 0x166   :  { %485 = vmatmul.msk.f32.vlgmr.msra.gmra.mxu2 %vm155_vm2, %v475_v15 }
 0x16e   :  { %486 = vmatmul.msk.f32.gmra.mxu2 %vm155_vm2, %v476_v16  ;;  %v413_v16 = vpop.permute.xlu0 %412 }
 0x176   :  { %487 = vmatmul.msk.f32.gmra.mxu2 %vm155_vm2, %v477_v17 }
 0x17e   :  { %488 = vmatmul.msk.f32.gmra.mxu2 %vm155_vm2, %v478_v18 }
 0x186   :  { %489 = vmatmul.msk.f32.gmra.mxu2 %vm155_vm2, %v479_v19 }
 0x1e9   :  { %v282_v20 = vpop.f32.mrf.mxu2 }
 0x1ea   :  { %v283_v34 = vadd.f32 %v282_v20, %v228_v33 }
 0x1f1   :  { %v285_v21 = vpop.f32.mrf.mxu2 }
 0x1f2   :  { %v286_v32 = vadd.f32 %v285_v21, %v233_v31 }
 0x1f9   :  { %v288_v22 = vpop.f32.mrf.mxu2 }
 0x1fa   :  { %v289_v29 = vadd.f32 %v288_v22, %v238_v27 }
 0x201   :  { %v291_v24 = vpop.f32.mrf.mxu2 }
 0x202   :  { %v292_v26 = vadd.f32 %v291_v24, %v243_v25 }
 0x204   :  { %534 = vtanh.f32 %v292_v26 }
 0x209   :  { %v294_v28 = vpop.f32.mrf.mxu2 }
 0x20a   :  { %v295_v30 = vadd.f32 %v294_v28, %v248_v23  ;;  %v535_v35 = vpop.eup %534 }
 0x20b   :  { %v305_v39 = vadd.f32 %v535_v35, %v211_v9 }
 0x20c   :  { %536 = vtanh.f32 %v295_v30 }
 0x20d   :  { %538 = vtanh.f32 %v289_v29 }
 0x20e   :  { %540 = vtanh.f32 %v286_v32 }
 0x20f   :  { %542 = vtanh.f32 %v283_v34 }
 0x212   :  { %v537_v36 = vpop.eup %536 }
 0x213   :  { %v306_v37 = vadd.f32 %v537_v36, %v212_v7  ;;  %v539_v38 = vpop.eup %538 }
 0x214   :  { %v541_v40 = vpop.eup %540  ;;  %v304_v41 = vadd.f32 %v539_v38, %v210_v11  ;;  %v401_v11 = vld [vmem:[%s789_s5] sm:$0xff]  ;;  %s583_s5 = smov 8  }
 0x215   :  { %370 = vmatpush.msra.mxu3 %v306_v37  ;;  %v543_v42 = vpop.eup %542  ;;  %v303_v43 = vadd.f32 %v541_v40, %v209_v13  ;;  %v408_v13 = vpop.permute.xlu2 %407 }
 0x216   :  { %v302_v44 = vadd.f32 %v543_v42, %v208_v14 }
 0x217   :  { %371 = vmatpush.msra.mxu3 %v305_v39 }
 0x219   :  { %372 = vmatpush.msra.mxu3 %v304_v41 }
 0x21b   :  { %373 = vmatpush.msra.mxu3 %v303_v43 }
 0x21d   :  { %374 = vmatpush.msra.mxu3 %v302_v44 }
 0x21e   :  { %500 = vmatmul.msk.f32.vlgmr.msra.gmra.mxu3 %vm155_vm2, %v490_v45 }
 0x226   :  { %501 = vmatmul.msk.f32.gmra.mxu3 %vm155_vm2, %v491_v46 }
 0x22e   :  { %502 = vmatmul.msk.f32.gmra.mxu3 %vm155_vm2, %v492_v47 }
 0x236   :  { %503 = vmatmul.msk.f32.gmra.mxu3 %vm155_vm2, %v493_v48 }
 0x23e   :  { %504 = vmatmul.msk.f32.gmra.mxu3 %vm155_vm2, %v494_v49 }
 0x2a1   :  { %v376_v50 = vpop.f32.mrf.mxu3 }
 0x2a2   :  { %v377_v0 = vadd.f32 %v376_v50, %v322_v63 }
 0x2a9   :  { %v379_v51 = vpop.f32.mrf.mxu3 }
 0x2aa   :  { %v380_v62 = vadd.f32 %v379_v51, %v327_v61 }
 0x2b1   :  { %v382_v52 = vpop.f32.mrf.mxu3 }
 0x2b2   :  { %v383_v59 = vadd.f32 %v382_v52, %v332_v57 }
 0x2b9   :  { %v385_v54 = vpop.f32.mrf.mxu3 }
 0x2ba   :  { %v386_v56 = vadd.f32 %v385_v54, %v337_v55 }
 0x2bc   :  { %544 = vtanh.f32 %v386_v56 }
 0x2c1   :  { %v388_v58 = vpop.f32.mrf.mxu3 }
 0x2c2   :  { %v389_v60 = vadd.f32 %v388_v58, %v342_v53  ;;  %v545_v1 = vpop.eup %544 }
 0x2c3   :  { %v399_v5 = vadd.f32 %v545_v1, %v305_v39 }
 0x2c4   :  { %546 = vtanh.f32 %v389_v60 }
 0x2c5   :  { %548 = vtanh.f32 %v383_v59 }
 0x2c6   :  { %550 = vtanh.f32 %v380_v62 }
 0x2c7   :  { %552 = vtanh.f32 %v377_v0 }
 0x2ca   :  { %v547_v2 = vpop.eup %546 }
 0x2cb   :  { %v400_v3 = vadd.f32 %v547_v2, %v306_v37  ;;  %v549_v4 = vpop.eup %548 }
 0x2cc   :  { %v551_v6 = vpop.eup %550  ;;  %v398_v7 = vadd.f32 %v549_v4, %v304_v41 }
 0x2cd   :  { %432 = vmatpush.msrb.mxu0 %v400_v3  ;;  %v553_v8 = vpop.eup %552  ;;  %v397_v9 = vadd.f32 %v551_v6, %v303_v43 }
 0x2ce   :  { %v396_v10 = vadd.f32 %v553_v8, %v302_v44 }
 0x2cf   :  { %433 = vmatpush.msrb.mxu0 %v399_v5 }
 0x2d1   :  { %434 = vmatpush.msrb.mxu0 %v398_v7 }
 0x2d3   :  { %435 = vmatpush.msrb.mxu0 %v397_v9 }
 0x2d5   :  { %436 = vmatpush.msrb.mxu0 %v396_v10 }
 0x2d6   :  { %505 = vmatmul.msk.f32.vlgmr.msrb.gmra.mxu0 %vm155_vm2, %v401_v11 }
 0x2de   :  { %506 = vmatmul.msk.f32.gmra.mxu0 %vm155_vm2, %v402_v12 }
 0x353   :  { %v438_v14 = vpop.f32.mrf.mxu0 }
 0x354   :  { %v439_v15 = vadd.f32 %v438_v14, %v408_v13 }
 0x356   :  { %444 = vst [vmem:[#allocation2] sm:$0xff] %v439_v15 }
 0x35b   :  { %v441_v17 = vpop.f32.mrf.mxu0 }
 0x35c   :  { %v442_v18 = vadd.f32 %v441_v17, %v413_v16 }
 0x35e   :  { %445 = vst [vmem:[#allocation2 + $0x8] sm:$0x3] %v442_v18 }
 0x35f   :  { %458 = dma.vmem_to_hbm [thread:$0]  %s451_s9, 256, %s453_s12, [#allocation3], %s582_s13, %s582_s13, %s583_s5  }
 0x360   :  { %578 = dma.done.wait [#allocation3], 256  }
 0x361   :  { %579 = vsyncadd [#allocation3], 4294967040 }
 0x362   :  { %463 = vsyncpa [#allocation3], 1 }

</bundles_post_ra>
